<compile_context>
chip_gen: v7x
topology: tpu7x:2x2x1
jax: 0.10.0
libtpu: 0.0.40
codegen_flags: <defaults>
</compile_context>

<pallas_src>
import jax
import jax.numpy as jnp
from jax import lax
from jax.experimental import pallas as pl
from jax.experimental.pallas import tpu as pltpu


def mlp_kernel(x_ref, w1_ref, b1_ref, w2_ref, b2_ref, o_ref):
    # x_ref:  (B, D) VMEM     w1_ref: (D, D) VMEM     b1_ref: (1, D) VMEM
    # w2_ref: (1, D) VMEM  (fc2 weight presented lane-dense as a row)
    # b2_ref: (1, 1) SMEM  (fc2 bias as a scalar)
    # o_ref:  (1, B) VMEM  (lane-dense output row; wrapper reshapes to (B, 1))
    x = x_ref[...]

    # fc1 + ReLU: one MXU matmul over the whole batch, f32 accumulation.
    h = jnp.dot(x, w1_ref[...], preferred_element_type=jnp.float32) + b1_ref[...]
    h = jnp.maximum(h, 0.0)

    # TODO(synk): dropout is identity here (PyTorch eval-mode semantics); training-mode
    # dropout would use pltpu.prng_seed + pltpu.stateful_bernoulli.

    # fc2: contract w2_row (1, D) with h (B, D) over D on the MXU -> (1, B),
    # i.e. the same "contract last dims" pattern flash-attention uses.  Output is
    # lane-dense, so the final store is a single row store instead of B column stores.
    out = lax.dot_general(
        w2_ref[...], h,
        dimension_numbers=(((1,), (1,)), ((), ())),
        preferred_element_type=jnp.float32,
    ) + b2_ref[0, 0]
    o_ref[...] = out.astype(o_ref.dtype)


def mlp_forward(x, w1, b1, w2, b2):
    """x: (B, D); w1: (D, D) [in,out]; b1: (1, D); w2: (D, 1) [in,out]; b2: (1, 1)."""
    B, D = x.shape
    w2_row = w2.reshape(1, D)  # fc2 weight as a lane-dense row

    vmem_spec = pl.BlockSpec(memory_space=pltpu.MemorySpace.VMEM)
    smem_spec = pl.BlockSpec(memory_space=pltpu.MemorySpace.SMEM)

    out_row = pl.pallas_call(
        mlp_kernel,
        out_shape=jax.ShapeDtypeStruct((1, B), x.dtype),
        in_specs=[
            vmem_spec,   # x       (B, D)
            vmem_spec,   # W1      (D, D)
            vmem_spec,   # b1      (1, D)
            vmem_spec,   # W2 row  (1, D)
            smem_spec,   # b2      (1, 1) scalar in SMEM
        ],
        out_specs=vmem_spec,
    )(x, w1, b1, w2_row, b2)

    # (1, B) -> (B, 1): identical contiguous data order, metadata-only reshape.
    return out_row.reshape(B, 1)


def reference_mlp(x, w1, b1, w2, b2):
    h = jnp.maximum(x @ w1 + b1, 0.0)
    return h @ w2 + b2


if __name__ == "__main__":
    # config['model']['intermediate_dims'] = 32; dropout irrelevant in eval mode.
    D = 32   # intermediate_dims
    B = 16   # batch of feature vectors

    key = jax.random.PRNGKey(0)
    kx, kw1, kb1, kw2, kb2 = jax.random.split(key, 5)

    x = jax.random.normal(kx, (B, D), dtype=jnp.float32)

    # PyTorch Linear default init: U(-1/sqrt(fan_in), 1/sqrt(fan_in)), fan_in = D.
    bound = 1.0 / (D ** 0.5)
    w1 = jax.random.uniform(kw1, (D, D), minval=-bound, maxval=bound, dtype=jnp.float32)
    b1 = jax.random.uniform(kb1, (1, D), minval=-bound, maxval=bound, dtype=jnp.float32)
    w2 = jax.random.uniform(kw2, (D, 1), minval=-bound, maxval=bound, dtype=jnp.float32)
    b2 = jax.random.uniform(kb2, (1, 1), minval=-bound, maxval=bound, dtype=jnp.float32)

    out = mlp_forward(x, w1, b1, w2, b2)
    out = jax.block_until_ready(out)

    ref = reference_mlp(x, w1, b1, w2, b2)
    assert out.shape == (B, 1)
    assert jnp.allclose(out, ref, atol=1e-5, rtol=1e-5), "mismatch vs reference"

    print("KERNEL_OK")
</pallas_src>

<mosaic_0001>
module attributes {stable_mosaic.version = 11 : i64} {
  func.func @mlp_kernel(%arg0: memref<16x32xf32, #tpu.memory_space<vmem>>, %arg1: memref<32x32xf32, #tpu.memory_space<vmem>>, %arg2: memref<1x32xf32, #tpu.memory_space<vmem>>, %arg3: memref<1x32xf32, #tpu.memory_space<vmem>>, %arg4: memref<1x1xf32, #tpu.memory_space<smem>>, %arg5: memref<1x16xf32, #tpu.memory_space<vmem>>) attributes {dimension_semantics = [], scalar_prefetch = 0 : i64, scratch_operands = 0 : i64, tpu.core_type = #tpu.core_type<tc>} {
    %c0 = arith.constant 0 : index
    %c0_0 = arith.constant 0 : index
    %0 = vector.load %arg0[%c0, %c0_0] : memref<16x32xf32, #tpu.memory_space<vmem>>, vector<16x32xf32>
    %c0_1 = arith.constant 0 : index
    %c0_2 = arith.constant 0 : index
    %1 = vector.load %arg1[%c0_1, %c0_2] : memref<32x32xf32, #tpu.memory_space<vmem>>, vector<32x32xf32>
    %cst = arith.constant dense<0.000000e+00> : vector<16x32xf32>
    %2 = tpu.matmul %0, %1, %cst {dimension_numbers = #tpu.dot_dimension_numbers<[1], [0], [0], [1], [0, 0, 1, 1], [], []>} : vector<16x32xf32>, vector<32x32xf32>, vector<16x32xf32> -> vector<16x32xf32>
    %c0_3 = arith.constant 0 : index
    %c0_4 = arith.constant 0 : index
    %3 = vector.load %arg2[%c0_3, %c0_4] : memref<1x32xf32, #tpu.memory_space<vmem>>, vector<1x32xf32>
    %4 = vector.broadcast %3 : vector<1x32xf32> to vector<16x32xf32>
    %5 = arith.addf %2, %4 : vector<16x32xf32>
    %cst_5 = arith.constant 0.000000e+00 : f32
    %6 = vector.broadcast %cst_5 : f32 to vector<16x32xf32>
    %7 = arith.maximumf %5, %6 : vector<16x32xf32>
    %c0_6 = arith.constant 0 : index
    %c0_7 = arith.constant 0 : index
    %8 = vector.load %arg3[%c0_6, %c0_7] : memref<1x32xf32, #tpu.memory_space<vmem>>, vector<1x32xf32>
    %cst_8 = arith.constant dense<0.000000e+00> : vector<1x16xf32>
    %9 = tpu.matmul %8, %7, %cst_8 {dimension_numbers = #tpu.dot_dimension_numbers<[1], [1], [0], [0], [0, 0, 1, 0], [], []>} : vector<1x32xf32>, vector<16x32xf32>, vector<1x16xf32> -> vector<1x16xf32>
    %c0_9 = arith.constant 0 : index
    %c0_10 = arith.constant 0 : index
    %10 = memref.load %arg4[%c0_9, %c0_10] : memref<1x1xf32, #tpu.memory_space<smem>>
    %11 = vector.broadcast %10 : f32 to vector<1x16xf32>
    %12 = arith.addf %9, %11 : vector<1x16xf32>
    %c0_11 = arith.constant 0 : index
    %c0_12 = arith.constant 0 : index
    %13 = vector.load %arg5[%c0_11, %c0_12] : memref<1x16xf32, #tpu.memory_space<vmem>>, vector<1x16xf32>
    tpu.vector_store %arg5[%c0_11, %c0_12], %12 {strides = array<i32>} : memref<1x16xf32, #tpu.memory_space<vmem>>, vector<1x16xf32>,
    return
  }
}

</mosaic_0001>

<bundles_post_ra>
// kernel: tpu_custom_call.1
= control target key start
LH: loop header
LB: loop body
LE: loop exit
PB: predicated region body
PF: predicated region fallthrough
CT: control target
= control target key end

     0   :  { %11 = vsyncpa [#allocation4], 0  ;;  %s460_s0 = inlined_call_operand.hbm [shape: f32[16,32], index: 0, kind: input, shape index: {}]   ;;  %s461_s1 = inlined_call_operand.hbm [shape: f32[32,32], index: 1, kind: input, shape index: {}]   ;;  %s462_s2 = inlined_call_operand.vmem [shape: f32[1,32], index: 2, kind: input, shape index: {}]   ;;  %s463_s3 = inlined_call_operand.vmem [shape: f32[1,32], index: 3, kind: input, shape index: {}]   ;;  %s464_s4 = inlined_call_operand.<no memory space> [shape: f32[1,1], index: 4, kind: input, shape index: {}]   ;;  %s465_s5 = inlined_call_operand.hbm [shape: f32[1,16], index: 5, kind: output, shape index: {}]  }
   0x1   :  { %12 = vsyncpa [#allocation7], 0 }
   0x2   :  { %13 = vsyncpa [#allocation5], 0  ;;  %s372_s18 = smov [#allocation3]   ;;  %s300_s22 = scalar_lea.hbm %s460_s0, 256 }
   0x3   :  { %s19_s19 = sshll.u32 %s372_s18, 4  ;;  %p301_p0 = scmp.ne.s32.totalorder %s460_s0, %s300_s22  ;;  %s20_s19 = int_to_ptr.vmem [resolvable:$true] %s19_s19 }
   0x4   :  { %p304_p1 = scmp.lt.u32.totalorder %s300_s22, %s460_s0 }
   0x6   :  { %p306_p2 = pnand %p304_p1, %p301_p0 }
   0x8   :  { %309 = shalt.err (!%p306_p2)
}
   0x9   :  { %s310_s27 = scalar_lea.vmem %s20_s19, 256  ;;  %p315_p4 = scmp.lt.s32.totalorder %s20_s19, %s20_s19 }
   0xa   :  { %p311_p3 = scmp.ne.s32.totalorder %s20_s19, %s310_s27  ;;  %p316_p5 = scmp.lt.s32.totalorder %s310_s27, %s310_s27 }
   0xc   :  { %p317_p6 = por %p316_p5, %p315_p4 }
   0xe   :  { %p318_p7 = pnand %p317_p6, %p311_p3 }
  0x10   :  { %321 = shalt.err (!%p318_p7)
}
  0x11   :  { %s373_s28 = smov 128   ;;  %s374_s29 = smov 8  }
  0x12   :  { %25 = dma.hbm_to_vmem [thread:$0]  %s460_s0, 256, %s20_s19, [#allocation4], %s373_s28, %s373_s28, %s374_s29  }
  0x13   :  { %s375_s7 = smov [#allocation6]   ;;  %s322_s11 = scalar_lea.hbm %s461_s1, 512 }
  0x14   :  { %s31_s8 = sshll.u32 %s375_s7, 4  ;;  %p323_p8 = scmp.ne.s32.totalorder %s461_s1, %s322_s11  ;;  %s32_s8 = int_to_ptr.vmem [resolvable:$true] %s31_s8 }
  0x15   :  { %p326_p9 = scmp.lt.u32.totalorder %s322_s11, %s461_s1 }
  0x17   :  { %p328_p10 = pnand %p326_p9, %p323_p8 }
  0x19   :  { %331 = shalt.err (!%p328_p10)
}
  0x1a   :  { %s332_s16 = scalar_lea.vmem %s32_s8, 512  ;;  %p337_p12 = scmp.lt.s32.totalorder %s32_s8, %s32_s8 }
  0x1b   :  { %p333_p11 = scmp.ne.s32.totalorder %s32_s8, %s332_s16  ;;  %p338_p13 = scmp.lt.s32.totalorder %s332_s16, %s332_s16 }
  0x1d   :  { %p339_p0 = por %p338_p13, %p337_p12 }
  0x1f   :  { %p340_p1 = pnand %p339_p0, %p333_p11 }
  0x21   :  { %343 = shalt.err (!%p340_p1)
}
  0x22   :  { %37 = dma.hbm_to_vmem [thread:$0]  %s461_s1, 512, %s32_s8, [#allocation7], %s373_s28, %s373_s28, %s374_s29  }
  0x23   :  { %366 = dma.done.wait [#allocation4], 256  }
  0x24   :  { %367 = vsyncadd [#allocation4], 4294967040 }
  0x25   :  { %368 = dma.done.wait [#allocation7], 512  }
  0x26   :  { %369 = vsyncadd [#allocation7], 4294966784  ;;  %vm63_vm0 = vcmask 261120   ;;  %v52_v0 = vld [vmem:[#allocation6] sm:$0xff]  ;;  %v53_v1 = vld [vmem:[#allocation6 + $0x8] sm:$0xff]  ;;  %v376_v8 = vmov 0.0|0.0   ;;  %v149_v19 = vstv %s464_s4 }
  0x27   :  { %v54_v2 = vld [vmem:[#allocation6 + $0x10] sm:$0xff]  ;;  %v280_v3 = vpack.c.bf16 %v53_v1, %v52_v0  ;;  %v55_v4 = vld [vmem:[#allocation6 + $0x18] sm:$0xff]  ;;  %288 = vmatprep.subr.bf16.mxu1 %v376_v8  ;;  %vm377_vm1 = vmmov 0   ;;  %v378_v9 = vmov 0.0   ;;  %vm290_vm2 = vmpackc.low %vm63_vm0, %vm63_vm0  ;;  %vm229_vm3 = vcmask 122880  }
  0x28   :  { %v50_v5 = vld [vmem:[#allocation3] sm:$0xff]  ;;  %v284_v6 = vpack.c.bf16 %v55_v4, %v54_v2  ;;  %v51_v7 = vld [vmem:[#allocation3 + $0x8] sm:$0xff]  ;;  %277 = vmatprep.mubr.msk.f32.mxu1 %vm377_vm1, %v378_v9 }
  0x29   :  { %270 = vmatprep.mubr.msk.f32.mxu0 %vm63_vm0, %v50_v5  ;;  %281 = vmatprep.subr.bf16.mxu0 %v280_v3  ;;  %v247_v10 = vld [vmem:[%s462_s2] ss:$0 sm:$0xff]  ;;  %s379_s2 = smov [#allocation8]  }
  0x2a   :  { %283 = vmatpush3.bf16.msra.mxu0 %v280_v3  ;;  %v147_v18 = vld [vmem:[%s463_s3] sm:$0x1]  ;;  %s237_s23 = sshll.u32 %s379_s2, 4  ;;  %s238_s23 = int_to_ptr.vmem [resolvable:$true] %s237_s23 }
  0x2b   :  { %285 = vmatprep.subr.bf16.mxu0 %v284_v6  ;;  %s344_s24 = scalar_lea.vmem %s238_s23, 16  ;;  %s348_s25 = scalar_lea.vmem %s238_s23, 32 }
  0x2c   :  { %p345_p2 = scmp.ne.s32.totalorder %s238_s23, %s344_s24  ;;  %p349_p3 = scmp.lt.s32.totalorder %s238_s23, %s238_s23 }
  0x2d   :  { %p350_p4 = scmp.lt.s32.totalorder %s348_s25, %s344_s24 }
  0x2e   :  { %287 = vmatpush3.bf16.msra.mxu0 %v284_v6 }
  0x2f   :  { %p351_p5 = por %p350_p4, %p349_p3 }
  0x31   :  { %271 = vmatmul.mubr.msk.f32.vlgmr.msra.gmra.mrb[0].mxu0 %vm63_vm0, %v51_v7  ;;  %p352_p6 = pnand %p351_p5, %p345_p2 }
 0x104   :  { %v272_v11 = vpop.f32.mrb[0].mxu0 }
 0x105   :  { %v142_v12 = vadd.f32 %v272_v11, %v247_v10  ;;  %v136_v13 = vpop.f32.mrb[1].mxu0 }
 0x106   :  { %v137_v14 = vadd.f32 %v247_v10, %v136_v13 }
 0x107   :  { %v146_v15 = vmax.f32 %v142_v12, 0.0 }
 0x108   :  { %v145_v16 = vmax.f32 %v137_v14, 0.0 }
 0x10a   :  { %v289_v17 = vpack.c.bf16 %v146_v15, %v145_v16 }
 0x10c   :  { %291 = vmatpush3.bf16.xpose.msk.msra.mxu1 %vm290_vm2, %v289_v17 }
 0x113   :  { %278 = vmatmul.mubr.msk.f32.vlgmr.msra.gmra.mrb[0].mxu1 %vm63_vm0, %v147_v18 }
 0x1e6   :  { %v225_v20 = vpop.f32.mrb[0].mxu1 }
 0x1e7   :  { %v226_v21 = vadd.f32 %v225_v20, %v149_v19  ;;  %v279_v22 = vpop.f32.mrb[1].mxu1 }
 0x1e9   :  { %230 = vst.msk [vmem:[#allocation8] sm:$0x1] %vm229_vm3, %v226_v21 }
 0x1ea   :  { %355 = shalt.err (!%p352_p6)
}
 0x1eb   :  { %s356_s4 = scalar_lea.hbm %s465_s5, 16 }
 0x1ec   :  { %p357_p7 = scmp.ne.s32.totalorder %s465_s5, %s356_s4  ;;  %p360_p8 = scmp.lt.u32.totalorder %s356_s4, %s465_s5 }
 0x1ee   :  { %p362_p9 = pnand %p360_p8, %p357_p7 }
 0x1f0   :  { %365 = shalt.err (!%p362_p9)
}
 0x1f1   :  { %240 = dma.vmem_to_hbm [thread:$0]  %s238_s23, 16, %s465_s5, [#allocation5]  }
 0x1f2   :  { %370 = dma.done.wait [#allocation5], 16  }
 0x1f3   :  { %371 = vsyncadd [#allocation5], 4294967280 }
 0x1f4   :  { %244 = vsyncpa [#allocation4], 1 }
 0x1f5   :  { %245 = vsyncpa [#allocation7], 1 }
 0x1f6   :  { %246 = vsyncpa [#allocation5], 1 }

</bundles_post_ra>
